<compile_context>
chip_gen: v5e
topology: v5e:2x2
jax: 0.10.0
libtpu: 0.0.40
codegen_flags: <defaults>
</compile_context>

<pallas_src>
import functools

import jax
import jax.numpy as jnp
from jax import lax
from jax.experimental import pallas as pl
from jax.experimental.pallas import tpu as pltpu


# ---------------------------------------------------------------------------
# Kernels
# ---------------------------------------------------------------------------

def _mlp3(x_ref, w1_ref, b1_ref, w2_ref, b2_ref, w3_ref, b3_ref):
    """Linear -> ReLU -> Linear -> ReLU -> Linear on one (TM, D_in) row tile."""
    x = x_ref[...]
    h1 = jnp.dot(x, w1_ref[...], preferred_element_type=jnp.float32) + b1_ref[...]
    h1 = jnp.maximum(h1, 0.0)
    h2 = jnp.dot(h1.astype(w2_ref.dtype), w2_ref[...],
                 preferred_element_type=jnp.float32) + b2_ref[...]
    h2 = jnp.maximum(h2, 0.0)
    h3 = jnp.dot(h2.astype(w3_ref.dtype), w3_ref[...],
                 preferred_element_type=jnp.float32) + b3_ref[...]
    return h3  # (TM, 2*F) float32


def _decoder_kernel_rel(x_ref, w1_ref, b1_ref, w2_ref, b2_ref, w3_ref, b3_ref,
                        o_ref):
    """pred_rel=True: raw MLP output, no residual add, no cur input."""
    o_ref[...] = _mlp3(x_ref, w1_ref, b1_ref, w2_ref, b2_ref,
                       w3_ref, b3_ref).astype(o_ref.dtype)


def _decoder_kernel_res(x_ref, w1_ref, b1_ref, w2_ref, b2_ref, w3_ref, b3_ref,
                        cur_ref, o_ref):
    """pred_rel=False: MLP output + cur_location broadcast over future steps.

    outputs.view(-1, F, 2) + cur_location (N,1,2) == on the flat (TM, 2F)
    layout: even lanes get cur_x, odd lanes get cur_y.  We build that with a
    lane iota + select (pure VPU work, hidden under the matmuls) instead of
    reading a pre-tiled (N, 2F) array from HBM.
    """
    h3 = _mlp3(x_ref, w1_ref, b1_ref, w2_ref, b2_ref, w3_ref, b3_ref)
    c = cur_ref[...]                                   # (TM, 2) f32
    lane_is_x = lax.broadcasted_iota(jnp.int32, o_ref.shape, 1) % 2 == 0
    cur_tiled = jnp.where(lane_is_x, c[:, 0:1], c[:, 1:2])   # (TM, 2F)
    o_ref[...] = (h3 + cur_tiled).astype(o_ref.dtype)


# ---------------------------------------------------------------------------
# Wrapper
# ---------------------------------------------------------------------------

def _choose_tiling(n, cap):
    """Pick (row_tile, padded_n): row tile <= cap, multiple of 8, waste < 8*t."""
    n8 = pl.cdiv(n, 8) * 8
    if n8 <= cap:
        return n8, n8
    t = pl.cdiv(n8, cap)
    tm = pl.cdiv(pl.cdiv(n8, t), 8) * 8
    return tm, tm * t


@functools.partial(
    jax.jit,
    static_argnames=("future_length", "pred_rel", "block_rows", "use_bf16"))
def decoder_forward(final_feature, cur_location, params, *, future_length,
                    pred_rel=False, block_rows=8192, use_bf16=False):
    """final_feature: (N, model_dim * multiplier) float32
       cur_location:  (N, 1, 2) float32
       returns:       (N, future_length, 2) float32
    """
    n, in_dim = final_feature.shape
    out_dim = future_length * 2
    w1, b1, w2, b2, w3, b3 = params
    h1d = w1.shape[1]
    h2d = w2.shape[1]

    # Optionally narrow HBM-resident tensors; accumulation stays f32 in-kernel.
    compute_dtype = jnp.bfloat16 if use_bf16 else jnp.float32
    x = final_feature.astype(compute_dtype)
    w1c = w1.astype(compute_dtype)
    w2c = w2.astype(compute_dtype)
    w3c = w3.astype(compute_dtype)
    b1c = b1.astype(jnp.float32)
    b2c = b2.astype(jnp.float32)
    b3c = b3.astype(jnp.float32)

    tm, n_pad = _choose_tiling(n, block_rows)
    grid = (n_pad // tm,)
    if n_pad != n:
        x = jnp.pad(x, ((0, n_pad - n), (0, 0)))

    x_spec = pl.BlockSpec((tm, in_dim), lambda i: (i, 0))
    out_spec = pl.BlockSpec((tm, out_dim), lambda i: (i, 0))
    # Weights/biases: full-array blocks, constant index -> stay resident in VMEM.
    w_specs = [
        pl.BlockSpec((in_dim, h1d), lambda i: (0, 0)),
        pl.BlockSpec((1, h1d), lambda i: (0, 0)),
        pl.BlockSpec((h1d, h2d), lambda i: (0, 0)),
        pl.BlockSpec((1, h2d), lambda i: (0, 0)),
        pl.BlockSpec((h2d, out_dim), lambda i: (0, 0)),
        pl.BlockSpec((1, out_dim), lambda i: (0, 0)),
    ]
    cparams = pltpu.CompilerParams(dimension_semantics=("parallel",))

    if pred_rel:
        out_flat = pl.pallas_call(
            _decoder_kernel_rel,
            out_shape=jax.ShapeDtypeStruct((n_pad, out_dim), jnp.float32),
            grid=grid,
            in_specs=[x_spec, *w_specs],
            out_specs=out_spec,
            compiler_params=cparams,
        )(x, w1c, b1c, w2c, b2c, w3c, b3c)
    else:
        cur = cur_location.reshape(n, 2).astype(jnp.float32)
        if n_pad != n:
            cur = jnp.pad(cur, ((0, n_pad - n), (0, 0)))
        cur_spec = pl.BlockSpec((tm, 2), lambda i: (i, 0))
        out_flat = pl.pallas_call(
            _decoder_kernel_res,
            out_shape=jax.ShapeDtypeStruct((n_pad, out_dim), jnp.float32),
            grid=grid,
            in_specs=[x_spec, *w_specs, cur_spec],
            out_specs=out_spec,
            compiler_params=cparams,
        )(x, w1c, b1c, w2c, b2c, w3c, b3c, cur)

    return out_flat[:n].reshape(n, future_length, 2)


def init_decoder_params(key, input_dim, hidden_dims, output_dim):
    dims = [input_dim, *hidden_dims, output_dim]
    params = []
    for i in range(len(dims) - 1):
        key, kw, kb = jax.random.split(key, 3)
        fan_in = dims[i]
        bound = 1.0 / jnp.sqrt(fan_in)
        w = jax.random.uniform(kw, (dims[i], dims[i + 1]), jnp.float32,
                               -bound, bound)
        b = jax.random.uniform(kb, (1, dims[i + 1]), jnp.float32, -bound, bound)
        params.extend([w, b])
    return tuple(params)


if __name__ == "__main__":
    # Synthetic "args": model_dim=16, hyper_scales=[5] -> multiplier=2,
    # decoder_hidden_dim=64, future_length=8.
    model_dim = 16
    multiplier = 2                                   # len(hyper_scales) + 1
    decoder_hidden_dim = 64
    future_length = 8

    input_dim = model_dim * multiplier               # 32
    hidden_dims = (decoder_hidden_dim, decoder_hidden_dim // 2)  # (64, 32)
    output_dim = future_length * 2                   # 16

    key = jax.random.PRNGKey(0)
    kf, kc, kp = jax.random.split(key, 3)

    n = 8  # number of agents (batch)
    final_feature = jax.random.normal(kf, (n, input_dim), jnp.float32)
    cur_location = jax.random.normal(kc, (n, 1, 2), jnp.float32)
    params = init_decoder_params(kp, input_dim, hidden_dims, output_dim)

    # Pure-JAX reference.
    w1, b1, w2, b2, w3, b3 = params
    h = jnp.maximum(final_feature @ w1 + b1, 0.0)
    h = jnp.maximum(h @ w2 + b2, 0.0)
    raw = (h @ w3 + b3).reshape(n, future_length, 2)
    ref_abs = raw + cur_location

    # pred_rel=False path (residual add inside the kernel).
    out = decoder_forward(final_feature, cur_location, params,
                          future_length=future_length, pred_rel=False)
    out = jax.block_until_ready(out)
    assert out.shape == (n, future_length, 2)
    assert jnp.allclose(out, ref_abs, atol=1e-5, rtol=1e-5)

    # pred_rel=True path (specialized kernel, no cur input / no add).
    out_rel = decoder_forward(final_feature, cur_location, params,
                              future_length=future_length, pred_rel=True)
    out_rel = jax.block_until_ready(out_rel)
    assert jnp.allclose(out_rel, raw, atol=1e-5, rtol=1e-5)

    # bf16-narrowed HBM path (v6e/v7x); f32 accumulation -> loose tolerance.
    out_bf16 = decoder_forward(final_feature, cur_location, params,
                               future_length=future_length, pred_rel=False,
                               use_bf16=True)
    out_bf16 = jax.block_until_ready(out_bf16)
    assert jnp.allclose(out_bf16, ref_abs, atol=5e-2, rtol=5e-2)

    print("KERNEL_OK")
</pallas_src>

<mosaic_0001>
module attributes {stable_mosaic.version = 11 : i64} {
  func.func @_decoder_kernel_res(%arg0: i32, %arg1: memref<8x32xf32, #tpu.memory_space<vmem>>, %arg2: memref<32x64xf32, #tpu.memory_space<vmem>>, %arg3: memref<1x64xf32, #tpu.memory_space<vmem>>, %arg4: memref<64x32xf32, #tpu.memory_space<vmem>>, %arg5: memref<1x32xf32, #tpu.memory_space<vmem>>, %arg6: memref<32x16xf32, #tpu.memory_space<vmem>>, %arg7: memref<1x16xf32, #tpu.memory_space<vmem>>, %arg8: memref<8x2xf32, #tpu.memory_space<vmem>>, %arg9: memref<8x16xf32, #tpu.memory_space<vmem>>) attributes {dimension_semantics = [#tpu.dimension_semantics<parallel>], iteration_bounds = array<i64: 1>, scalar_prefetch = 0 : i64, scratch_operands = 0 : i64, tpu.core_type = #tpu.core_type<tc>, window_params = [{transform_indices = @transform_0, window_bounds = array<i64: 8, 32>}, {pipeline_mode = #tpu.pipeline_mode<synchronous>, transform_indices = @transform_1, window_bounds = array<i64: 32, 64>}, {pipeline_mode = #tpu.pipeline_mode<synchronous>, transform_indices = @transform_2, window_bounds = array<i64: 1, 64>}, {pipeline_mode = #tpu.pipeline_mode<synchronous>, transform_indices = @transform_3, window_bounds = array<i64: 64, 32>}, {pipeline_mode = #tpu.pipeline_mode<synchronous>, transform_indices = @transform_4, window_bounds = array<i64: 1, 32>}, {pipeline_mode = #tpu.pipeline_mode<synchronous>, transform_indices = @transform_5, window_bounds = array<i64: 32, 16>}, {pipeline_mode = #tpu.pipeline_mode<synchronous>, transform_indices = @transform_6, window_bounds = array<i64: 1, 16>}, {transform_indices = @transform_7, window_bounds = array<i64: 8, 2>}, {transform_indices = @transform_8, window_bounds = array<i64: 8, 16>}]} {
    %c0 = arith.constant 0 : index
    %c0_0 = arith.constant 0 : index
    %0 = vector.load %arg1[%c0, %c0_0] : memref<8x32xf32, #tpu.memory_space<vmem>>, vector<8x32xf32>
    %c0_1 = arith.constant 0 : index
    %c0_2 = arith.constant 0 : index
    %1 = vector.load %arg2[%c0_1, %c0_2] : memref<32x64xf32, #tpu.memory_space<vmem>>, vector<32x64xf32>
    %cst = arith.constant dense<0.000000e+00> : vector<8x64xf32>
    %2 = tpu.matmul %0, %1, %cst {dimension_numbers = #tpu.dot_dimension_numbers<[1], [0], [0], [1], [0, 0, 1, 1], [], []>} : vector<8x32xf32>, vector<32x64xf32>, vector<8x64xf32> -> vector<8x64xf32>
    %c0_3 = arith.constant 0 : index
    %c0_4 = arith.constant 0 : index
    %3 = vector.load %arg3[%c0_3, %c0_4] : memref<1x64xf32, #tpu.memory_space<vmem>>, vector<1x64xf32>
    %4 = vector.broadcast %3 : vector<1x64xf32> to vector<8x64xf32>
    %5 = arith.addf %2, %4 : vector<8x64xf32>
    %cst_5 = arith.constant 0.000000e+00 : f32
    %6 = vector.broadcast %cst_5 : f32 to vector<8x64xf32>
    %7 = arith.maximumf %5, %6 : vector<8x64xf32>
    %c0_6 = arith.constant 0 : index
    %c0_7 = arith.constant 0 : index
    %8 = vector.load %arg4[%c0_6, %c0_7] : memref<64x32xf32, #tpu.memory_space<vmem>>, vector<64x32xf32>
    %cst_8 = arith.constant dense<0.000000e+00> : vector<8x32xf32>
    %9 = tpu.matmul %7, %8, %cst_8 {dimension_numbers = #tpu.dot_dimension_numbers<[1], [0], [0], [1], [0, 0, 1, 1], [], []>} : vector<8x64xf32>, vector<64x32xf32>, vector<8x32xf32> -> vector<8x32xf32>
    %c0_9 = arith.constant 0 : index
    %c0_10 = arith.constant 0 : index
    %10 = vector.load %arg5[%c0_9, %c0_10] : memref<1x32xf32, #tpu.memory_space<vmem>>, vector<1x32xf32>
    %11 = vector.broadcast %10 : vector<1x32xf32> to vector<8x32xf32>
    %12 = arith.addf %9, %11 : vector<8x32xf32>
    %cst_11 = arith.constant 0.000000e+00 : f32
    %13 = vector.broadcast %cst_11 : f32 to vector<8x32xf32>
    %14 = arith.maximumf %12, %13 : vector<8x32xf32>
    %c0_12 = arith.constant 0 : index
    %c0_13 = arith.constant 0 : index
    %15 = vector.load %arg6[%c0_12, %c0_13] : memref<32x16xf32, #tpu.memory_space<vmem>>, vector<32x16xf32>
    %cst_14 = arith.constant dense<0.000000e+00> : vector<8x16xf32>
    %16 = tpu.matmul %14, %15, %cst_14 {dimension_numbers = #tpu.dot_dimension_numbers<[1], [0], [0], [1], [0, 0, 1, 1], [], []>} : vector<8x32xf32>, vector<32x16xf32>, vector<8x16xf32> -> vector<8x16xf32>
    %c0_15 = arith.constant 0 : index
    %c0_16 = arith.constant 0 : index
    %17 = vector.load %arg7[%c0_15, %c0_16] : memref<1x16xf32, #tpu.memory_space<vmem>>, vector<1x16xf32>
    %18 = vector.broadcast %17 : vector<1x16xf32> to vector<8x16xf32>
    %19 = arith.addf %16, %18 : vector<8x16xf32>
    %c0_17 = arith.constant 0 : index
    %c0_18 = arith.constant 0 : index
    %20 = vector.load %arg8[%c0_17, %c0_18] : memref<8x2xf32, #tpu.memory_space<vmem>>, vector<8x2xf32>
    %21 = tpu.iota {dimensions = array<i32: 1>} : vector<8x16xi32>
    %c2_i32 = arith.constant 2 : i32
    %c0_i32 = arith.constant 0 : i32
    %22 = arith.cmpi eq, %c2_i32, %c0_i32 : i32
    %c1_i32 = arith.constant 1 : i32
    %23 = arith.select %22, %c1_i32, %c2_i32 : i32
    %24 = vector.broadcast %23 : i32 to vector<8x16xi32>
    %25 = arith.remsi %21, %24 : vector<8x16xi32>
    %c0_i32_19 = arith.constant 0 : i32
    %26 = vector.broadcast %c0_i32_19 : i32 to vector<8x16xi32>
    %27 = arith.cmpi ne, %25, %26 : vector<8x16xi32>
    %c0_i32_20 = arith.constant 0 : i32
    %28 = vector.broadcast %c0_i32_20 : i32 to vector<8x16xi32>
    %29 = arith.cmpi slt, %25, %28 : vector<8x16xi32>
    %c0_i32_21 = arith.constant 0 : i32
    %30 = arith.cmpi slt, %23, %c0_i32_21 : i32
    %31 = vector.broadcast %30 : i1 to vector<8x16xi1>
    %32 = vector.broadcast %31 : vector<8x16xi1> to vector<8x16xi1>
    %33 = arith.xori %29, %32 : vector<8x16xi1>
    %34 = arith.andi %33, %27 : vector<8x16xi1>
    %35 = vector.broadcast %23 : i32 to vector<8x16xi32>
    %36 = arith.addi %25, %35 : vector<8x16xi32>
    %37 = arith.select %34, %36, %25 : vector<8x16xi1>, vector<8x16xi32>
    %c0_i32_22 = arith.constant 0 : i32
    %38 = vector.broadcast %c0_i32_22 : i32 to vector<8x16xi32>
    %39 = arith.cmpi eq, %37, %38 : vector<8x16xi32>
    %40 = vector.extract_strided_slice %20 {offsets = [0, 0], sizes = [8, 1], strides = [1, 1]} : vector<8x2xf32> to vector<8x1xf32>
    %41 = vector.extract_strided_slice %20 {offsets = [0, 1], sizes = [8, 1], strides = [1, 1]} : vector<8x2xf32> to vector<8x1xf32>
    %42 = vector.shape_cast %40 : vector<8x1xf32> to vector<8x1xf32>
    %43 = vector.broadcast %42 : vector<8x1xf32> to vector<8x16xf32>
    %44 = vector.shape_cast %41 : vector<8x1xf32> to vector<8x1xf32>
    %45 = vector.broadcast %44 : vector<8x1xf32> to vector<8x16xf32>
    %46 = arith.select %39, %43, %45 : vector<8x16xi1>, vector<8x16xf32>
    %47 = arith.addf %19, %46 : vector<8x16xf32>
    %c0_23 = arith.constant 0 : index
    %c0_24 = arith.constant 0 : index
    %48 = vector.load %arg9[%c0_23, %c0_24] : memref<8x16xf32, #tpu.memory_space<vmem>>, vector<8x16xf32>
    tpu.vector_store %arg9[%c0_23, %c0_24], %47 {strides = array<i32>} : memref<8x16xf32, #tpu.memory_space<vmem>>, vector<8x16xf32>,
    return
  }
  func.func @transform_0(%arg0: i32) -> (i32, i32) {
    %c0_i32 = arith.constant 0 : i32
    %c0_i32_0 = arith.constant 0 : i32
    return %arg0, %c0_i32 : i32, i32
  }
  func.func @transform_1(%arg0: i32) -> (i32, i32) {
    %c0_i32 = arith.constant 0 : i32
    %c0_i32_0 = arith.constant 0 : i32
    %c0_i32_1 = arith.constant 0 : i32
    return %c0_i32, %c0_i32_0 : i32, i32
  }
  func.func @transform_2(%arg0: i32) -> (i32, i32) {
    %c0_i32 = arith.constant 0 : i32
    %c0_i32_0 = arith.constant 0 : i32
    %c0_i32_1 = arith.constant 0 : i32
    return %c0_i32, %c0_i32_0 : i32, i32
  }
  func.func @transform_3(%arg0: i32) -> (i32, i32) {
    %c0_i32 = arith.constant 0 : i32
    %c0_i32_0 = arith.constant 0 : i32
    %c0_i32_1 = arith.constant 0 : i32
    return %c0_i32, %c0_i32_0 : i32, i32
  }
  func.func @transform_4(%arg0: i32) -> (i32, i32) {
    %c0_i32 = arith.constant 0 : i32
    %c0_i32_0 = arith.constant 0 : i32
    %c0_i32_1 = arith.constant 0 : i32
    return %c0_i32, %c0_i32_0 : i32, i32
  }
  func.func @transform_5(%arg0: i32) -> (i32, i32) {
    %c0_i32 = arith.constant 0 : i32
    %c0_i32_0 = arith.constant 0 : i32
    %c0_i32_1 = arith.constant 0 : i32
    return %c0_i32, %c0_i32_0 : i32, i32
  }
  func.func @transform_6(%arg0: i32) -> (i32, i32) {
    %c0_i32 = arith.constant 0 : i32
    %c0_i32_0 = arith.constant 0 : i32
    %c0_i32_1 = arith.constant 0 : i32
    return %c0_i32, %c0_i32_0 : i32, i32
  }
  func.func @transform_7(%arg0: i32) -> (i32, i32) {
    %c0_i32 = arith.constant 0 : i32
    %c0_i32_0 = arith.constant 0 : i32
    return %arg0, %c0_i32 : i32, i32
  }
  func.func @transform_8(%arg0: i32) -> (i32, i32) {
    %c0_i32 = arith.constant 0 : i32
    %c0_i32_0 = arith.constant 0 : i32
    return %arg0, %c0_i32 : i32, i32
  }
}

</mosaic_0001>

<bundles_post_ra>
// kernel: decoder_forward.1
= control target key start
LH: loop header
LB: loop body
LE: loop exit
PB: predicated region body
PF: predicated region fallthrough
CT: control target
= control target key end

     0   :  { %vm38_vm0 = vcmask 261120   ;;  %vm75_vm1 = vcmask 523264   ;;  %v174_v22 = vmov 0   ;;  %v175_v23 = vmov 1   ;;  %s289_s1 = inlined_call_operand.vmem [shape: f32[32,64], index: 1, kind: input, shape index: {}]   ;;  %s290_s3 = inlined_call_operand.vmem [shape: f32[64,32], index: 3, kind: input, shape index: {}]   ;;  %s291_s0 = inlined_call_operand.vmem [shape: f32[8,32], index: 0, kind: input, shape index: {}]   ;;  %s292_s2 = inlined_call_operand.vmem [shape: f32[1,64], index: 2, kind: input, shape index: {}]   ;;  %s293_s4 = inlined_call_operand.vmem [shape: f32[1,32], index: 4, kind: input, shape index: {}]   ;;  %s294_s5 = inlined_call_operand.vmem [shape: f32[32,16], index: 5, kind: input, shape index: {}]   ;;  %s295_s7 = inlined_call_operand.vmem [shape: f32[8,2], index: 7, kind: input, shape index: {}]   ;;  %s296_s6 = inlined_call_operand.vmem [shape: f32[1,16], index: 6, kind: input, shape index: {}]   ;;  %s297_s8 = inlined_call_operand.vmem [shape: f32[8,16], index: 8, kind: output, shape index: {}]  }
   0x1   :  { %v33_v0 = vld [vmem:[%s289_s1 + $0x18] sm:$0xff]  ;;  %v32_v1 = vld [vmem:[%s289_s1 + $0x10] sm:$0xff]  ;;  %v31_v3 = vld [vmem:[%s289_s1 + $0x8] sm:$0xff]  ;;  %169 = vset.pattern.permute.xlu0 %v174_v22  ;;  %v132_v28 = vlaneseq  ;;  %vm158_vm3 = vcmask 130048  }
   0x2   :  { %54 = vmatpush.msra.mxu0 %v33_v0  ;;  %v70_v2 = vld [vmem:[%s290_s3 + $0x38] sm:$0xff]  ;;  %v69_v4 = vld [vmem:[%s290_s3 + $0x30] sm:$0xff]  ;;  %v68_v5 = vld [vmem:[%s290_s3 + $0x28] sm:$0xff] }
   0x3   :  { %87 = vmatpush.msra.mxu1 %v70_v2  ;;  %v30_v6 = vld [vmem:[%s289_s1] sm:$0xff]  ;;  %v66_v9 = vld [vmem:[%s290_s3 + $0x18] sm:$0xff]  ;;  %v65_v10 = vld [vmem:[%s290_s3 + $0x10] sm:$0xff]  ;;  %v133_v30 = vand.u32 127, %v132_v28 }
   0x4   :  { %55 = vmatpush.msra.mxu0 %v32_v1  ;;  %v29_v7 = vld [vmem:[%s291_s0] sm:$0xff]  ;;  %v64_v11 = vld [vmem:[%s290_s3 + $0x8] sm:$0xff]  ;;  %v103_v13 = vld [vmem:[%s294_s5 + $0x18] sm:$0xff] }
   0x5   :  { %88 = vmatpush.msra.mxu1 %v69_v4  ;;  %v67_v8 = vld [vmem:[%s290_s3 + $0x20] sm:$0xff]  ;;  %123 = vmatpush.msra.mxu2 %v103_v13  ;;  %v102_v18 = vld [vmem:[%s294_s5 + $0x10] sm:$0xff]  ;;  %v101_v19 = vld [vmem:[%s294_s5 + $0x8] sm:$0xff]  ;;  %v138_v31 = vand.u32 1, %v133_v30 }
   0x6   :  { %56 = vmatpush.msra.mxu0 %v31_v3  ;;  %v63_v12 = vld [vmem:[%s290_s3] sm:$0xff] }
   0x7   :  { %89 = vmatpush.msra.mxu1 %v68_v5  ;;  %v171_v14 = vld [vmem:[%s292_s2] ss:$0 sm:$0xff]  ;;  %124 = vmatpush.msra.mxu2 %v102_v18  ;;  %vm146_vm2 = vcmp.eq.s32.totalorder %v138_v31, 0 }
   0x8   :  { %57 = vmatpush.msra.mxu0 %v30_v6  ;;  %v100_v20 = vld [vmem:[%s294_s5] sm:$0xff] }
   0x9   :  { %164 = vmatmul.msk.f32.vlgmr.msra.gmra.mxu0 %vm38_vm0, %v29_v7  ;;  %90 = vmatpush.msra.mxu1 %v67_v8  ;;  %v131_v21 = vld [vmem:[%s295_s7] sm:$0xff] }
   0xa   :  { %125 = vmatpush.msra.mxu2 %v101_v19  ;;  %149 = vperm.xlu0 %169, %v131_v21   ;;  %v172_v24 = vld [vmem:[%s293_s4] ss:$0 sm:$0xff] }
   0xb   :  { %91 = vmatpush.msra.mxu1 %v66_v9  ;;  %v173_v32 = vld [vmem:[%s296_s6] ss:$0 sm:$0xff] }
   0xc   :  { %126 = vmatpush.msra.mxu2 %v100_v20 }
   0xd   :  { %92 = vmatpush.msra.mxu1 %v65_v10 }
   0xf   :  { %93 = vmatpush.msra.mxu1 %v64_v11 }
  0x11   :  { %94 = vmatpush.msra.mxu1 %v63_v12 }
  0x12   :  { %170 = vset.pattern.permute.xlu0 %v175_v23 }
  0x13   :  { %153 = vperm.xlu0 %170, %v131_v21  }
  0x7c   :  { %v150_v29 = vpop.permute.xlu0 %149 }
  0x85   :  { %v154_v33 = vpop.permute.xlu0 %153 }
  0x86   :  { %v59_v15 = vpop.f32.mrf.mxu0  ;;  %v156_v36 = vsel %vm146_vm2, %v150_v29, %v154_v33 }
  0x87   :  { %v60_v16 = vadd.f32 %v171_v14, %v59_v15 }
  0x89   :  { %v62_v17 = vmax.f32 %v60_v16, 0.0 }
  0x8b   :  { %165 = vmatmul.msk.f32.vlgmr.msra.gmra.mxu1 %vm75_vm1, %v62_v17 }
 0x108   :  { %v96_v25 = vpop.f32.mrf.mxu1 }
 0x109   :  { %v97_v26 = vadd.f32 %v172_v24, %v96_v25 }
 0x10b   :  { %v99_v27 = vmax.f32 %v97_v26, 0.0 }
 0x10d   :  { %166 = vmatmul.msk.f32.vlgmr.msra.gmra.mxu2 %vm38_vm0, %v99_v27 }
 0x190   :  { %v128_v34 = vpop.f32.mrf.mxu2 }
 0x191   :  { %v129_v35 = vadd.f32 %v173_v32, %v128_v34 }
 0x193   :  { %v157_v37 = vadd.f32 %v156_v36, %v129_v35 }
 0x195   :  { %159 = vst.msk [vmem:[%s297_s8] sm:$0xff] %vm158_vm3, %v157_v37 }

</bundles_post_ra>
